<compile_context>
chip_gen: v7x
topology: tpu7x:2x2x1
jax: 0.10.0
libtpu: 0.0.40
codegen_flags: <defaults>
</compile_context>

<pallas_src>
import functools

import jax
import jax.numpy as jnp
from jax import lax
from jax.experimental import pallas as pl
from jax.experimental.pallas import tpu as pltpu

EPS = 1e-5


def _layernorm_kernel(x_ref, scale_ref, shift_ref, o_ref, *, d_actual):
    # x_ref: (tile_rows, d); scale_ref/shift_ref: (1, d)
    x = x_ref[...].astype(jnp.float32)

    n = jnp.float32(d_actual)
    s = jnp.sum(x, axis=-1, keepdims=True)
    mean = s / n
    sq = jnp.sum(x * x, axis=-1, keepdims=True)
    # Unbiased variance (divide by N-1), matching torch.Tensor.var default.
    # Clamp >= 0: one-pass (sumsq - s*mean) can go slightly negative in f32.
    var = jnp.maximum((sq - s * mean) / jnp.float32(max(d_actual - 1, 1)), 0.0)
    inv_std = lax.rsqrt(var + jnp.float32(EPS))

    # Row-scalar (tile_rows,1) factors broadcast directly; only xn and y are
    # full-tile f32 temporaries.
    xn = (x - mean) * inv_std
    y = xn * scale_ref[...].astype(jnp.float32) + shift_ref[...].astype(jnp.float32)
    o_ref[...] = y.astype(o_ref.dtype)


def layer_norm(x, scale, shift):
    """x: (..., D); scale, shift: (D,). Returns same shape/dtype as x."""
    orig_shape = x.shape
    d = orig_shape[-1]
    x2 = x.reshape(-1, d)
    rows = x2.shape[0]
    scale2 = scale.reshape(1, d)
    shift2 = shift.reshape(1, d)

    itemsize = jnp.dtype(x.dtype).itemsize
    row_align = 8 if itemsize >= 4 else 16          # sublane packing for bf16
    rows_aligned = ((rows + row_align - 1) // row_align) * row_align

    # ---- row tile sized from a conservative VMEM budget ---------------------
    # Per element of one tile:
    #   pipeline buffers: 2x input + 2x output at HBM dtype -> 4*itemsize
    #   in-kernel f32 intermediates (x_f32, xn, y)           -> ~12 bytes
    per_elem_bytes = 4 * itemsize + 12
    budget_bytes = 12 * 1024 * 1024                  # ~1-3 MiB blocks: at roofline
    tile_rows = budget_bytes // (per_elem_bytes * d)
    tile_rows = max(row_align, min(1024, tile_rows))
    tile_rows = (tile_rows // row_align) * row_align

    # Guarantee multiple grid steps (>= ~4 when the problem allows) so the
    # pipeline overlaps DMA/compute and both v7x TensorCores get work.
    step_cap = max(row_align, (rows_aligned // 4 // row_align) * row_align)
    tile_rows = min(tile_rows, step_cap, rows_aligned)

    grid = pl.cdiv(rows, tile_rows)                  # ragged last tile is OK

    # ---- scoped VMEM limit: cover blocks + f32 temps, stay below physical ---
    block_bytes = tile_rows * d * itemsize
    f32_tmp_bytes = 3 * tile_rows * d * 4
    need_bytes = 4 * block_bytes + f32_tmp_bytes + (1 << 20)
    try:
        vmem_phys = int(pltpu.get_tpu_info().vmem_capacity_bytes)
    except Exception:
        vmem_phys = 64 * 1024 * 1024                 # v7x-safe fallback
    vmem_cap = int(0.75 * vmem_phys)                 # headroom below physical
    vmem_limit = min(max(32 * 1024 * 1024, need_bytes), vmem_cap)

    kernel = functools.partial(_layernorm_kernel, d_actual=d)

    out = pl.pallas_call(
        kernel,
        out_shape=jax.ShapeDtypeStruct((rows, d), x.dtype),
        grid_spec=pltpu.PrefetchScalarGridSpec(
            num_scalar_prefetch=0,
            grid=(grid,),
            in_specs=[
                pl.BlockSpec((tile_rows, d), lambda i: (i, 0)),
                pl.BlockSpec((1, d), lambda i: (0, 0)),
                pl.BlockSpec((1, d), lambda i: (0, 0)),
            ],
            out_specs=pl.BlockSpec((tile_rows, d), lambda i: (i, 0)),
        ),
        compiler_params=pltpu.CompilerParams(
            dimension_semantics=("parallel",),       # rows are independent
            vmem_limit_bytes=int(vmem_limit),
        ),
    )(x2, scale2, shift2)

    return out.reshape(orig_shape)


def _reference(x, scale, shift):
    mean = jnp.mean(x, axis=-1, keepdims=True)
    var = jnp.sum((x - mean) ** 2, axis=-1, keepdims=True) / (x.shape[-1] - 1)
    return scale * (x - mean) / jnp.sqrt(var + EPS) + shift


if __name__ == "__main__":
    key = jax.random.PRNGKey(0)
    k_x, k_s, k_b = jax.random.split(key, 3)

    batch, seq, hidden = 2, 8, 32   # embed_dim = 32
    x = jax.random.normal(k_x, (batch, seq, hidden), dtype=jnp.float32)

    # 1) parameters at module init values (nn.Parameter ones / zeros)
    scale0 = jnp.ones((hidden,), dtype=jnp.float32)
    shift0 = jnp.zeros((hidden,), dtype=jnp.float32)
    y0 = layer_norm(x, scale0, shift0)
    jax.block_until_ready(y0)
    assert jnp.allclose(y0, _reference(x, scale0, shift0), atol=1e-4, rtol=1e-5), \
        "mismatch vs reference (init params)"

    # 2) non-trivial deterministic params to exercise the fused affine path
    scale1 = 1.0 + 0.1 * jax.random.normal(k_s, (hidden,), dtype=jnp.float32)
    shift1 = 0.1 * jax.random.normal(k_b, (hidden,), dtype=jnp.float32)
    y1 = layer_norm(x, scale1, shift1)
    jax.block_until_ready(y1)
    assert jnp.allclose(y1, _reference(x, scale1, shift1), atol=1e-4, rtol=1e-5), \
        "mismatch vs reference (random params)"

    print("KERNEL_OK")
</pallas_src>

<mosaic_0001>
module attributes {stable_mosaic.version = 11 : i64} {
  func.func @_layernorm_kernel(%arg0: i32, %arg1: memref<8x32xf32, #tpu.memory_space<vmem>>, %arg2: memref<1x32xf32, #tpu.memory_space<vmem>>, %arg3: memref<1x32xf32, #tpu.memory_space<vmem>>, %arg4: memref<8x32xf32, #tpu.memory_space<vmem>>) attributes {dimension_semantics = [#tpu.dimension_semantics<parallel>], iteration_bounds = array<i64: 2>, scalar_prefetch = 0 : i64, scratch_operands = 0 : i64, tpu.core_type = #tpu.core_type<tc>, window_params = [{transform_indices = @transform_0, window_bounds = array<i64: 8, 32>}, {pipeline_mode = #tpu.pipeline_mode<synchronous>, transform_indices = @transform_1, window_bounds = array<i64: 1, 32>}, {pipeline_mode = #tpu.pipeline_mode<synchronous>, transform_indices = @transform_2, window_bounds = array<i64: 1, 32>}, {transform_indices = @transform_3, window_bounds = array<i64: 8, 32>}]} {
    %c0 = arith.constant 0 : index
    %c0_0 = arith.constant 0 : index
    %0 = vector.load %arg1[%c0, %c0_0] : memref<8x32xf32, #tpu.memory_space<vmem>>, vector<8x32xf32>
    %cst = arith.constant dense<0.000000e+00> : vector<8xf32>
    %1 = vector.multi_reduction <add>, %0, %cst [1] : vector<8x32xf32> to vector<8xf32>
    %2 = vector.shape_cast %1 : vector<8xf32> to vector<8x1xf32>
    %cst_1 = arith.constant 3.200000e+01 : f32
    %3 = vector.broadcast %cst_1 : f32 to vector<8x1xf32>
    %4 = arith.divf %2, %3 : vector<8x1xf32>
    %5 = arith.mulf %0, %0 : vector<8x32xf32>
    %cst_2 = arith.constant dense<0.000000e+00> : vector<8xf32>
    %6 = vector.multi_reduction <add>, %5, %cst_2 [1] : vector<8x32xf32> to vector<8xf32>
    %7 = vector.shape_cast %6 : vector<8xf32> to vector<8x1xf32>
    %8 = arith.mulf %2, %4 : vector<8x1xf32>
    %9 = arith.subf %7, %8 : vector<8x1xf32>
    %cst_3 = arith.constant 3.100000e+01 : f32
    %10 = vector.broadcast %cst_3 : f32 to vector<8x1xf32>
    %11 = arith.divf %9, %10 : vector<8x1xf32>
    %cst_4 = arith.constant 0.000000e+00 : f32
    %12 = vector.broadcast %cst_4 : f32 to vector<8x1xf32>
    %13 = arith.maximumf %11, %12 : vector<8x1xf32>
    %cst_5 = arith.constant 9.99999974E-6 : f32
    %14 = vector.broadcast %cst_5 : f32 to vector<8x1xf32>
    %15 = arith.addf %13, %14 : vector<8x1xf32>
    %16 = math.rsqrt %15 : vector<8x1xf32>
    %17 = vector.broadcast %4 : vector<8x1xf32> to vector<8x32xf32>
    %18 = arith.subf %0, %17 : vector<8x32xf32>
    %19 = vector.broadcast %16 : vector<8x1xf32> to vector<8x32xf32>
    %20 = arith.mulf %18, %19 : vector<8x32xf32>
    %c0_6 = arith.constant 0 : index
    %c0_7 = arith.constant 0 : index
    %21 = vector.load %arg2[%c0_6, %c0_7] : memref<1x32xf32, #tpu.memory_space<vmem>>, vector<1x32xf32>
    %22 = vector.broadcast %21 : vector<1x32xf32> to vector<8x32xf32>
    %23 = arith.mulf %20, %22 : vector<8x32xf32>
    %c0_8 = arith.constant 0 : index
    %c0_9 = arith.constant 0 : index
    %24 = vector.load %arg3[%c0_8, %c0_9] : memref<1x32xf32, #tpu.memory_space<vmem>>, vector<1x32xf32>
    %25 = vector.broadcast %24 : vector<1x32xf32> to vector<8x32xf32>
    %26 = arith.addf %23, %25 : vector<8x32xf32>
    %c0_10 = arith.constant 0 : index
    %c0_11 = arith.constant 0 : index
    %27 = vector.load %arg4[%c0_10, %c0_11] : memref<8x32xf32, #tpu.memory_space<vmem>>, vector<8x32xf32>
    tpu.vector_store %arg4[%c0_10, %c0_11], %26 {strides = array<i32>} : memref<8x32xf32, #tpu.memory_space<vmem>>, vector<8x32xf32>,
    return
  }
  func.func @transform_0(%arg0: i32) -> (i32, i32) {
    %c0_i32 = arith.constant 0 : i32
    %c0_i32_0 = arith.constant 0 : i32
    return %arg0, %c0_i32 : i32, i32
  }
  func.func @transform_1(%arg0: i32) -> (i32, i32) {
    %c0_i32 = arith.constant 0 : i32
    %c0_i32_0 = arith.constant 0 : i32
    %c0_i32_1 = arith.constant 0 : i32
    return %c0_i32, %c0_i32_0 : i32, i32
  }
  func.func @transform_2(%arg0: i32) -> (i32, i32) {
    %c0_i32 = arith.constant 0 : i32
    %c0_i32_0 = arith.constant 0 : i32
    %c0_i32_1 = arith.constant 0 : i32
    return %c0_i32, %c0_i32_0 : i32, i32
  }
  func.func @transform_3(%arg0: i32) -> (i32, i32) {
    %c0_i32 = arith.constant 0 : i32
    %c0_i32_0 = arith.constant 0 : i32
    return %arg0, %c0_i32 : i32, i32
  }
}

</mosaic_0001>

<bundles_post_ra>
// kernel: tpu_custom_call.1
= control target key start
LH: loop header
LB: loop body
LE: loop exit
PB: predicated region body
PF: predicated region fallthrough
CT: control target
= control target key end

     0   :  { %8 = vsyncpa [#allocation3], 0  ;;  %s659_s0 = inlined_call_operand.hbm [shape: f32[16,32], index: 0, kind: input, shape index: {}]   ;;  %s660_s1 = inlined_call_operand.vmem [shape: f32[1,32], index: 1, kind: input, shape index: {}]   ;;  %s661_s2 = inlined_call_operand.vmem [shape: f32[1,32], index: 2, kind: input, shape index: {}]   ;;  %s662_s3 = inlined_call_operand.hbm [shape: f32[16,32], index: 3, kind: output, shape index: {}]  }
   0x1   :  { %10 = vsyncpa [#allocation3 + $0x1], 0 }
   0x2   :  { %11 = vsyncpa [#allocation4], 0 }
   0x3   :  { %13 = vsyncpa [#allocation4 + $0x1], 0  ;;  %s489_s12 = smov 0   ;;  %s491_s13 = smov 0  }
   0x4   :  { %s493_s14 = smov 0   ;;  %s495_s15 = smov 0  }
   0x5 LB: > { %s510_s16 = sadd.s32 4294967295, %s465_s15   ;;  %s307_s17 = sadd.s32 4294967294, %s465_s15   ;;  %s465_s15 = sphi %s495_s15, %s677_s15   ;;  %s461_s14 = sphi %s493_s14, %s676_s14   ;;  %s457_s13 = sphi %s491_s13, %s675_s13   ;;  %s453_s12 = sphi %s489_s12, %s674_s12  }
   0x6   : > { %s514_s18 = sadd.s32 1, %s465_s15   ;;  %s26_s19 = sadd.s32 1, %s461_s14 }
   0x7   : > { %s23_s20 = ssub.s32 %s465_s15, %s514_s18  ;;  %p33_p0 = scmp.ne.s32.totalorder %s461_s14, %s457_s13 }
   0x8   : > { %p24_p1 = scmp.eq.s32.totalorder %s23_s20, 0  ;;  %p34_p2 = scmp.eq.s32.totalorder %s465_s15, 0 }
   0x9   : > { %p39_p3 = scmp.ne.s32.totalorder %s457_s13, %s453_s12  ;;  %p40_p4 = scmp.eq.s32.totalorder %s510_s16, 0 }
   0xa   : > { %s526_s21 = scalar_select %p24_p1, %s461_s14, %s26_s19  }
   0xb   : > { %p528_p5 = por %p34_p2, %p33_p0  ;;  %p532_p6 = por %p40_p4, %p39_p3 }
   0xc   : > { %p105_p7 = scmp.eq.s32.totalorder %s510_s16, 1  ;;  %p111_p8 = scmp.eq.s32.totalorder %s307_s17, 1 }
   0xd   : > { %p333_p10 = scmp.lt.s32.totalorder %s465_s15, 2  ;;  %s137_s26 = sand.u32 1, %s461_s14  }
   0xe   : > { %p539_p11 = por %p105_p7, %p33_p0  ;;  %p543_p12 = por %p111_p8, %p39_p3 }
   0xf   : > { %s311_s27 = sshll.u32 %s465_s15, 7  ;;  %s310_s28 = sshll.u32 %s137_s26, 3 }
  0x10   : > { %s666_s24 = scalar_select %p539_p11, 1, 0 }
  0x11   : > { %s667_s25 = scalar_select %p543_p12, 1, 0 }
  0x12   : > { %s552_s4 = scalar_lea.hbm %s659_s0, %s311_s27  ;;  %s141_s5 = scalar_lea.vmem [#allocation2], %s310_s28 }
  0x13   : > { %s148_s6 = sshll.u32 %s141_s5, 4  ;;  %p556_p13 = pnand %p333_p10, %p528_p5  ;;  %s560_s6 = int_to_ptr.vmem [resolvable:$true] %s148_s6 }
  0x14   : > { %s138_s8 = scalar_lea.sflag [#allocation3], %s137_s26  ;;  %s369_s9 = scalar_lea.hbm %s552_s4, 128 }
  0x15   : > { %p370_p2 = scmp.ne.s32.totalorder %s552_s4, %s369_s9  ;;  %p371_p3 = pneg %p556_p13 }
  0x16   : > { %s374_s17 = scalar_lea.hbm %s659_s0, 256  ;;  %p375_p5 = scmp.lt.u32.totalorder %s552_s4, %s659_s0 }
  0x17   : > { %p372_p4 = pnand %p371_p3, %p370_p2  ;;  %p376_p8 = scmp.lt.u32.totalorder %s374_s17, %s369_s9 }
  0x18   : > { %p378_p9 = scmp.lt.u32.totalorder %s369_s9, %s552_s4 }
  0x19   : > { %p373_p7 = pneg %p372_p4  ;;  %p377_p10 = por %p376_p8, %p375_p5 }
  0x1b   : > { %p379_p0 = por %p378_p9, %p377_p10 }
  0x1d   : > { %p380_p1 = pnand %p379_p0, %p373_p7 }
  0x1f   : > { %383 = shalt.err (!%p380_p1)
}
  0x20   : > { %s384_s22 = scalar_lea.vmem %s560_s6, 128  ;;  %s467_s26 = smov [#allocation2]  }
  0x21   : > { %p385_p2 = scmp.ne.s32.totalorder %s560_s6, %s384_s22  ;;  %s389_s27 = sshll.u32 %s467_s26, 4  ;;  %s390_s27 = int_to_ptr.vmem [resolvable:$false] %s389_s27 }
  0x22   : > { %s391_s28 = scalar_lea.vmem %s390_s27, 256  ;;  %p392_p11 = scmp.lt.s32.totalorder %s560_s6, %s390_s27 }
  0x23   : > { %p387_p4 = pnand %p385_p2, %p371_p3  ;;  %p393_p5 = scmp.lt.s32.totalorder %s391_s28, %s384_s22 }
  0x25   : > { %p388_p12 = pneg %p387_p4  ;;  %p394_p8 = por %p393_p5, %p392_p11 }
  0x27   : > { %p395_p9 = pnand %p394_p8, %p388_p12 }
  0x29   : > { %398 = shalt.err (!%p395_p9)
}
  0x2a   : > { %328 = dma.hbm_to_vmem [thread:$0]  (!%p556_p13), %s552_s4, 128, %s560_s6, %s138_s8  }
  0x2b   : > { %p669_p0 = scmp.lt.s32.totalorder %s465_s15, 3  ;;  %p670_p1 = scmp.ge.s32.totalorder %s465_s15, 1 }
  0x2d   : > { %p154_p3 = pnand %p670_p1, %p669_p0 }
  0x2e   : > { %s594_s29 = sand.u32 (!%p154_p3), 1, %s457_s13  }
  0x2f   : > { %157 = sbr.rel (%p154_p3) target bundleno = 242 (0xf2), region = 32  ;;  %s313_s30 = sshll.u32 (!%p154_p3), %s594_s29, 3 }
  0x30   : > { %s160_s5 = scalar_lea.sflag (!%p154_p3), [#allocation3], %s594_s29  ;;  %s163_s9 = scalar_lea.vmem (!%p154_p3), [#allocation2], %s313_s30 }
  0x36   : > { %444 = dma.done.wait (%p532_p6), %s160_s5, 128  }
  0x37   : > { %446 = vsyncadd (%p532_p6), %s160_s5, 4294967168  ;;  %vm187_vm0 = vcmask 261120   ;;  %v186_v0 = vld [vmem:[%s163_s9] sm:$0xff]  ;;  %s318_s8 = sshll.u32 %s510_s16, 7  ;;  %s185_s10 = scalar_lea.vmem [#allocation5], %s313_s30 }
  0x38   : > { %v188_v1 = vsel %vm187_vm0, %v186_v0, 0.0  ;;  %v193_v2 = vmul.f32 %v186_v0, %v186_v0  ;;  %v315_v14 = vld [vmem:[%s660_s1] ss:$0 sm:$0xff]  ;;  %s237_s11 = sshll.u32 %s185_s10, 4  ;;  %s614_s20 = scalar_lea.hbm %s662_s3, %s318_s8  ;;  %s616_s11 = int_to_ptr.vmem [resolvable:$true] %s237_s11 }
  0x39   : > { %189 = vadd.xlane.f32.xlu0 %v188_v1  ;;  %v316_v16 = vld [vmem:[%s661_s2] ss:$0 sm:$0xff]  ;;  %s224_s22 = scalar_lea.sflag [#allocation4], %s594_s29  ;;  %s399_s26 = scalar_lea.vmem %s616_s11, 128 }
  0x3a   : > { %v194_v3 = vsel %vm187_vm0, %v193_v2, 0.0  ;;  %p400_p6 = scmp.ne.s32.totalorder %s616_s11, %s399_s26  ;;  %p671_p11 = scmp.ne.s32.totalorder %s666_s24, 0 }
  0x3b   : > { %s468_s16 = smov [#allocation5]  }
  0x3c   : > { %p401_p12 = pnand %p400_p6, %p671_p11  ;;  %s403_s27 = sshll.u32 %s468_s16, 4  ;;  %s404_s27 = int_to_ptr.vmem [resolvable:$false] %s403_s27 }
  0x3d   : > { %195 = vadd.xlane.f32.xlu0 %v194_v3  ;;  %s405_s28 = scalar_lea.vmem %s404_s27, 256  ;;  %p406_p7 = scmp.lt.s32.totalorder %s616_s11, %s404_s27 }
  0x3e   : > { %p402_p13 = pneg %p401_p12  ;;  %p407_p10 = scmp.lt.s32.totalorder %s405_s28, %s399_s26 }
  0x40   : > { %p408_p2 = por %p407_p10, %p406_p7 }
  0x42   : > { %p409_p4 = pnand %p408_p2, %p402_p13 }
  0xc6   : > { %v190_v4 = vpop.xlane.xlu0 %189 }
  0xc7   : > { %v192_v5 = vmul.f32 0.03125, %v190_v4 }
  0xc9   : > { %v197_v6 = vmul.f32 %v192_v5, %v190_v4  ;;  %v204_v12 = vsub.f32 %v186_v0, %v192_v5 }
  0xca   : > { %v196_v7 = vpop.xlane.xlu0 %195 }
  0xcb   : > { %v198_v8 = vsub.f32 %v196_v7, %v197_v6 }
  0xcd   : > { %v200_v9 = vmul.f32 0.032258064, %v198_v8 }
  0xcf   : > { %v201_v10 = vmax.f32 %v200_v9, 0.0 }
  0xd1   : > { %v202_v11 = vadd.f32 1e-05, %v201_v10 }
  0xd3   : > { %367 = vrsqrt.f32 %v202_v11 }
  0xdd   : > { %v368_v13 = vpop.eup %367 }
  0xde   : > { %v205_v15 = vmul.f32 %v368_v13, %v204_v12 }
  0xe0   : > { %v213_v17 = vmul.f32 %v315_v14, %v205_v15 }
  0xe2   : > { %v221_v18 = vadd.f32 %v316_v16, %v213_v17 }
  0xe4   : > { %222 = vst.msk [vmem:[%s185_s10] sm:$0xff] %vm187_vm0, %v221_v18 }
  0xe5   : > { %412 = shalt.err (!%p409_p4)
}
  0xe6   : > { %s413_s29 = scalar_lea.hbm %s614_s20, 128  ;;  %s417_s9 = scalar_lea.hbm %s662_s3, 256 }
  0xe7   : > { %p414_p5 = scmp.ne.s32.totalorder %s614_s20, %s413_s29  ;;  %p418_p0 = scmp.lt.u32.totalorder %s614_s20, %s662_s3 }
  0xe8   : > { %p419_p1 = scmp.lt.u32.totalorder %s417_s9, %s413_s29  ;;  %p421_p6 = scmp.lt.u32.totalorder %s413_s29, %s614_s20 }
  0xe9   : > { %p415_p8 = pnand %p414_p5, %p671_p11 }
  0xea   : > { %p420_p3 = por %p419_p1, %p418_p0 }
  0xeb   : > { %p416_p9 = pneg %p415_p8 }
  0xec   : > { %p422_p12 = por %p421_p6, %p420_p3 }
  0xee   : > { %p423_p13 = pnand %p422_p12, %p416_p9 }
  0xf0   : > { %426 = shalt.err (!%p423_p13)
}
  0xf1   : > { %323 = dma.vmem_to_hbm [thread:$0]  (%p671_p11), %s616_s11, 128, %s614_s20, %s224_s22  }
  0xf2 PF: > { %s249_s6 = sand.u32 1, %s453_s12   ;;  %p672_p7 = scmp.ne.s32.totalorder %s667_s25, 0 }
  0xf3   : > { %p673_p10 = scmp.ge.s32.totalorder %s465_s15, 2  ;;  %s250_s7 = scalar_lea.sflag [#allocation4], %s249_s6 }
  0xf5   : > { %p330_p2 = pnand %p673_p10, %p672_p7 }
  0xf7   : > { %448 = dma.done.wait (!%p330_p2), %s250_s7, 128  }
  0xf8   : > { %450 = vsyncadd (!%p330_p2), %s250_s7, 4294967168  ;;  %p16_p4 = scmp.ge.s32.totalorder %s514_s18, 4   ;;  %s674_s12 = smov %s457_s13 }
  0xf9   : > { %s675_s13 = smov %s461_s14  ;;  %s676_s14 = smov %s526_s21 }
  0xfa   : > { %s677_s15 = smov %s514_s18  ;;  %18 = sbr.rel (!%p16_p4) target bundleno = 5 (0x5), region = 77 }
 0x101   :  { %255 = vsyncpa [#allocation3], 1 }
 0x102   :  { %257 = vsyncpa [#allocation3 + $0x1], 1 }
 0x103   :  { %258 = vsyncpa [#allocation4], 1 }
 0x104   :  { %260 = vsyncpa [#allocation4 + $0x1], 1 }

</bundles_post_ra>
